<compile_context>
chip_gen: v5e
topology: v5e:2x2
jax: 0.10.0
libtpu: 0.0.40
codegen_flags: <defaults>
</compile_context>

<pallas_src>
import math

import jax
import jax.numpy as jnp
import numpy as np
from jax.experimental import pallas as pl
from jax.experimental.pallas import tpu as pltpu


def _tlinear_kernel(x_ref, wt_ref, blin_ref, s_ref, o_ref):
    # x_ref:    (TM, C)          bf16  row tile of flattened features
    # wt_ref:   (C, d_out*C)     bf16  linear_c weight, pre-transposed
    # blin_ref: (1, d_out*C)     f32   linear_c bias
    # s_ref:    (d_out*C, d_out) bf16  block-diagonal ones (per-group reduce)
    # o_ref:    (TM, d_out)      f32
    C = x_ref.shape[1]
    DC = wt_ref.shape[1]
    d_out = DC // C

    x_bf = x_ref[...]                                                # bf16

    # linear_c on the MXU: bf16 operands, f32 accumulation; bias added in f32.
    wc = jnp.dot(x_bf, wt_ref[...], preferred_element_type=jnp.float32)
    wc = wc + blin_ref[...]                                          # (TM, DC) f32

    # denom[n, c] = sum_o (|wc[n, o, c]| + 1e-5).
    # Group-sum over the d_out blocks of C lanes via XLU rolls: because every
    # shift is a multiple of C and d_out*C == DC, the cyclic tree leaves the
    # full group sum in every lane; we read the first C lanes.
    a = jnp.abs(wc) + 1e-5
    if d_out & (d_out - 1) == 0:
        acc = a
        s = C
        while s < DC:                          # log2(d_out) roll + add steps
            acc = acc + pltpu.roll(acc, shift=s, axis=1)
            s *= 2
    else:
        acc = a
        for k in range(1, d_out):              # d_out - 1 roll + add steps
            acc = acc + pltpu.roll(a, shift=k * C, axis=1)
    denom = acc[:, :C]                                               # (TM, C) f32

    # EUP approximate reciprocal + one Newton-Raphson step -> near-exact.
    inv = pl.reciprocal(denom, approx=True)
    inv = inv * (2.0 - denom * inv)

    # z[n, c] = x[n, c] / denom[n, c]; replicate across the d_out groups.
    z = x_bf.astype(jnp.float32) * inv                               # (TM, C) f32
    z_tiled = jnp.concatenate([z] * d_out, axis=1)                   # (TM, DC) f32

    # out[n, o] = sum_c wc[n, o, c] * z[n, c]  via block-diagonal ones matrix.
    prod = (wc * z_tiled).astype(jnp.bfloat16)
    out = jnp.dot(prod, s_ref[...], preferred_element_type=jnp.float32)
    o_ref[...] = out.astype(o_ref.dtype)                             # (TM, d_out)


def _round_up(x, m):
    return ((x + m - 1) // m) * m


def _choose_tiling(n_rows, row_align, max_tm=1024):
    """Pick (tm, num_tiles): pad only to the sublane multiple, split into >= 2
    tiles when there is enough work (v7x has 2 TensorCores), and use large
    tiles for big inputs to amortize per-grid-step overhead."""
    rows = max(row_align, _round_up(n_rows, row_align))
    if rows <= max_tm:
        if rows >= 2 * 256:                     # enough for two decent strips
            tm = _round_up(pl.cdiv(rows, 2), row_align)
            return tm, 2
        return rows, 1
    num = pl.cdiv(rows, max_tm)
    if num % 2 == 1:                            # even grid -> clean 2-way split
        num += 1
    tm = _round_up(pl.cdiv(rows, num), row_align)
    return tm, num


def tlinear_forward(features, w_lin, b_lin, d_out, *, max_tm=1024):
    """features: (B, N, d_in); w_lin: (d_out*d_in, d_in); b_lin: (d_out*d_in,)."""
    B, N, C = features.shape
    DC = d_out * C
    R = B * N

    # MXU operands in bf16 (f32 accumulation inside the kernel).
    x2 = features.reshape(R, C).astype(jnp.bfloat16)

    row_align = 16                              # bf16 sublane packing
    tm, num_tiles = _choose_tiling(R, row_align, max_tm)
    r_pad = tm * num_tiles
    if r_pad != R:
        # Zero rows are harmless: denom >= d_out*1e-5, their outputs are 0
        # and are sliced away below.
        x2 = jnp.pad(x2, ((0, r_pad - R), (0, 0)))

    wt = jnp.transpose(w_lin).astype(jnp.bfloat16)          # (C, DC)
    b2 = b_lin.reshape(1, DC).astype(jnp.float32)           # f32 bias
    # Block-diagonal ones: per-group lane reduction on the MXU (exact in bf16).
    s_mat = jnp.repeat(jnp.eye(d_out, dtype=jnp.bfloat16), C, axis=0)  # (DC, d_out)

    out = pl.pallas_call(
        _tlinear_kernel,
        out_shape=jax.ShapeDtypeStruct((r_pad, d_out), features.dtype),
        grid_spec=pltpu.PrefetchScalarGridSpec(
            num_scalar_prefetch=0,
            grid=(num_tiles,),
            in_specs=[
                pl.BlockSpec((tm, C), lambda i: (i, 0)),
                pl.BlockSpec((C, DC), lambda i: (0, 0)),
                pl.BlockSpec((1, DC), lambda i: (0, 0)),
                pl.BlockSpec((DC, d_out), lambda i: (0, 0)),
            ],
            out_specs=pl.BlockSpec((tm, d_out), lambda i: (i, 0)),
        ),
        compiler_params=pltpu.CompilerParams(
            dimension_semantics=("parallel",),
            vmem_limit_bytes=32 * 1024 * 1024),
    )(x2, wt, b2, s_mat)

    return out[:R].reshape(B, N, d_out)


def ref_forward(x, w_lin, b_lin, d_out):
    """Pure-JAX f32 reference mirroring the PyTorch forward."""
    B, N, C = x.shape
    wc = jnp.einsum('bnc,oc->bno', x, w_lin) + b_lin           # (B, N, d_out*d_in)
    wc = wc.reshape(B, N, d_out, C)
    wc = wc / (jnp.abs(wc) + 1e-5).sum(-2, keepdims=True)
    return jnp.einsum('bnoc,bnc->bno', wc, x)                  # (B, N, d_out)


def init_params(key, d_in, d_out):
    """Deterministic init matching nn.Linear defaults (kaiming_uniform a=sqrt(5))."""
    k_w, k_b = jax.random.split(key)
    bound = 1.0 / math.sqrt(d_in)
    w_lin = jax.random.uniform(k_w, (d_out * d_in, d_in), jnp.float32, -bound, bound)
    b_lin = jax.random.uniform(k_b, (d_out * d_in,), jnp.float32, -bound, bound)
    # self.W / self.mask / self.b are created in __init__ but unused in forward().
    return w_lin, b_lin


if __name__ == "__main__":
    B, N, d_in, d_out = 2, 8, 32, 8

    key = jax.random.PRNGKey(0)
    k_x, k_p = jax.random.split(key)
    features = jax.random.normal(k_x, (B, N, d_in), jnp.float32)
    w_lin, b_lin = init_params(k_p, d_in, d_out)

    out = tlinear_forward(features, w_lin, b_lin, d_out)
    out = jax.block_until_ready(out)

    ref = ref_forward(features, w_lin, b_lin, d_out)
    # Tolerance reflects bf16 MXU operands (per perf review) vs the f32
    # reference; the normalization itself is near-exact (NR-refined recip).
    np.testing.assert_allclose(np.asarray(out), np.asarray(ref), rtol=2e-2, atol=2e-2)

    print("KERNEL_OK")
</pallas_src>

<mosaic_0001>
module attributes {stable_mosaic.version = 11 : i64} {
  func.func @_tlinear_kernel(%arg0: i32, %arg1: memref<16x32xbf16, #tpu.memory_space<vmem>>, %arg2: memref<32x256xbf16, #tpu.memory_space<vmem>>, %arg3: memref<1x256xf32, #tpu.memory_space<vmem>>, %arg4: memref<256x8xbf16, #tpu.memory_space<vmem>>, %arg5: memref<16x8xf32, #tpu.memory_space<vmem>>) attributes {dimension_semantics = [#tpu.dimension_semantics<parallel>], iteration_bounds = array<i64: 1>, scalar_prefetch = 0 : i64, scratch_operands = 0 : i64, tpu.core_type = #tpu.core_type<tc>, window_params = [{transform_indices = @transform_0, window_bounds = array<i64: 16, 32>}, {pipeline_mode = #tpu.pipeline_mode<synchronous>, transform_indices = @transform_1, window_bounds = array<i64: 32, 256>}, {pipeline_mode = #tpu.pipeline_mode<synchronous>, transform_indices = @transform_2, window_bounds = array<i64: 1, 256>}, {pipeline_mode = #tpu.pipeline_mode<synchronous>, transform_indices = @transform_3, window_bounds = array<i64: 256, 8>}, {transform_indices = @transform_4, window_bounds = array<i64: 16, 8>}]} {
    %c0 = arith.constant 0 : index
    %c0_0 = arith.constant 0 : index
    %0 = vector.load %arg1[%c0, %c0_0] : memref<16x32xbf16, #tpu.memory_space<vmem>>, vector<16x32xbf16>
    %c0_1 = arith.constant 0 : index
    %c0_2 = arith.constant 0 : index
    %1 = vector.load %arg2[%c0_1, %c0_2] : memref<32x256xbf16, #tpu.memory_space<vmem>>, vector<32x256xbf16>
    %cst = arith.constant dense<0.000000e+00> : vector<16x256xf32>
    %2 = tpu.matmul %0, %1, %cst {dimension_numbers = #tpu.dot_dimension_numbers<[1], [0], [0], [1], [0, 0, 1, 1], [], []>} : vector<16x32xbf16>, vector<32x256xbf16>, vector<16x256xf32> -> vector<16x256xf32>
    %c0_3 = arith.constant 0 : index
    %c0_4 = arith.constant 0 : index
    %3 = vector.load %arg3[%c0_3, %c0_4] : memref<1x256xf32, #tpu.memory_space<vmem>>, vector<1x256xf32>
    %4 = vector.broadcast %3 : vector<1x256xf32> to vector<16x256xf32>
    %5 = arith.addf %2, %4 : vector<16x256xf32>
    %6 = math.absf %5 : vector<16x256xf32>
    %cst_5 = arith.constant 9.99999974E-6 : f32
    %7 = vector.broadcast %cst_5 : f32 to vector<16x256xf32>
    %8 = arith.addf %6, %7 : vector<16x256xf32>
    %c32_i32 = arith.constant 32 : i32
    %9 = tpu.dynamic_rotate %8 by %c32_i32 dim 1 : vector<16x256xf32>, i32 -> vector<16x256xf32>
    %10 = arith.addf %8, %9 : vector<16x256xf32>
    %c64_i32 = arith.constant 64 : i32
    %11 = tpu.dynamic_rotate %10 by %c64_i32 dim 1 : vector<16x256xf32>, i32 -> vector<16x256xf32>
    %12 = arith.addf %10, %11 : vector<16x256xf32>
    %c128_i32 = arith.constant 128 : i32
    %13 = tpu.dynamic_rotate %12 by %c128_i32 dim 1 : vector<16x256xf32>, i32 -> vector<16x256xf32>
    %14 = arith.addf %12, %13 : vector<16x256xf32>
    %15 = vector.extract_strided_slice %14 {offsets = [0, 0], sizes = [16, 32], strides = [1, 1]} : vector<16x256xf32> to vector<16x32xf32>
    %16 = tpu.reciprocal %15 {approx = true} : vector<16x32xf32> -> vector<16x32xf32>
    %17 = arith.mulf %15, %16 : vector<16x32xf32>
    %cst_6 = arith.constant 2.000000e+00 : f32
    %18 = vector.broadcast %cst_6 : f32 to vector<16x32xf32>
    %19 = arith.subf %18, %17 : vector<16x32xf32>
    %20 = arith.mulf %16, %19 : vector<16x32xf32>
    %21 = arith.extf %0 : vector<16x32xbf16> to vector<16x32xf32>
    %22 = arith.mulf %21, %20 : vector<16x32xf32>
    %23 = tpu.concatenate %22, %22, %22, %22, %22, %22, %22, %22 in 1 : vector<16x32xf32>, vector<16x32xf32>, vector<16x32xf32>, vector<16x32xf32>, vector<16x32xf32>, vector<16x32xf32>, vector<16x32xf32>, vector<16x32xf32> -> vector<16x256xf32>
    %24 = arith.mulf %5, %23 : vector<16x256xf32>
    %25 = arith.truncf %24 : vector<16x256xf32> to vector<16x256xbf16>
    %c0_7 = arith.constant 0 : index
    %c0_8 = arith.constant 0 : index
    %26 = vector.load %arg4[%c0_7, %c0_8] : memref<256x8xbf16, #tpu.memory_space<vmem>>, vector<256x8xbf16>
    %cst_9 = arith.constant dense<0.000000e+00> : vector<16x8xf32>
    %27 = tpu.matmul %25, %26, %cst_9 {dimension_numbers = #tpu.dot_dimension_numbers<[1], [0], [0], [1], [0, 0, 1, 1], [], []>} : vector<16x256xbf16>, vector<256x8xbf16>, vector<16x8xf32> -> vector<16x8xf32>
    %c0_10 = arith.constant 0 : index
    %c0_11 = arith.constant 0 : index
    %28 = vector.load %arg5[%c0_10, %c0_11] : memref<16x8xf32, #tpu.memory_space<vmem>>, vector<16x8xf32>
    tpu.vector_store %arg5[%c0_10, %c0_11], %27 {strides = array<i32>} : memref<16x8xf32, #tpu.memory_space<vmem>>, vector<16x8xf32>,
    return
  }
  func.func @transform_0(%arg0: i32) -> (i32, i32) {
    %c0_i32 = arith.constant 0 : i32
    %c0_i32_0 = arith.constant 0 : i32
    return %arg0, %c0_i32 : i32, i32
  }
  func.func @transform_1(%arg0: i32) -> (i32, i32) {
    %c0_i32 = arith.constant 0 : i32
    %c0_i32_0 = arith.constant 0 : i32
    %c0_i32_1 = arith.constant 0 : i32
    return %c0_i32, %c0_i32_0 : i32, i32
  }
  func.func @transform_2(%arg0: i32) -> (i32, i32) {
    %c0_i32 = arith.constant 0 : i32
    %c0_i32_0 = arith.constant 0 : i32
    %c0_i32_1 = arith.constant 0 : i32
    return %c0_i32, %c0_i32_0 : i32, i32
  }
  func.func @transform_3(%arg0: i32) -> (i32, i32) {
    %c0_i32 = arith.constant 0 : i32
    %c0_i32_0 = arith.constant 0 : i32
    %c0_i32_1 = arith.constant 0 : i32
    return %c0_i32, %c0_i32_0 : i32, i32
  }
  func.func @transform_4(%arg0: i32) -> (i32, i32) {
    %c0_i32 = arith.constant 0 : i32
    %c0_i32_0 = arith.constant 0 : i32
    return %arg0, %c0_i32 : i32, i32
  }
}

</mosaic_0001>

<bundles_post_ra>
// kernel: tpu_custom_call.1
= control target key start
LH: loop header
LB: loop body
LE: loop exit
PB: predicated region body
PF: predicated region fallthrough
CT: control target
= control target key end

     0   :  { %vm55_vm0 = vcmask 261120   ;;  %v103_v32 = vlaneseq  ;;  %s458_s11 = smov 96   ;;  %vm167_vm3 = vcmask 523264   ;;  %vm170_vm4 = vcmask 785408   ;;  %s603_s1 = inlined_call_operand.vmem [shape: bf16[32,256], index: 1, kind: input, shape index: {}]   ;;  %s604_s0 = inlined_call_operand.vmem [shape: bf16[16,32], index: 0, kind: input, shape index: {}]   ;;  %s605_s2 = inlined_call_operand.vmem [shape: f32[1,256], index: 2, kind: input, shape index: {}]   ;;  %s606_s3 = inlined_call_operand.vmem [shape: bf16[256,8], index: 3, kind: input, shape index: {}]   ;;  %s607_s4 = inlined_call_operand.vmem [shape: f32[16,8], index: 4, kind: output, shape index: {}]  }
   0x1   :  { %v356_v0 = vld [vmem:[%s603_s1 + $0x10] sm:$0xf]  ;;  %v432_v1 = vld [vmem:[%s603_s1 + $0x14] sm:$0xf0]  ;;  %v431_v2 = vld [vmem:[%s603_s1 + $0x14] sm:$0xf] }
   0x2   :  { %v357_v3 = vor.u32 %v432_v1, %v356_v0  ;;  %v358_v4 = vld [vmem:[%s603_s1 + $0x18] sm:$0xf0]  ;;  %v348_v5 = vld [vmem:[%s603_s1] sm:$0xf]  ;;  %v430_v6 = vld [vmem:[%s603_s1 + $0x4] sm:$0xf0] }
   0x3   :  { %v361_v7 = vor.u32 %v431_v2, %v358_v4  ;;  %v429_v8 = vld [vmem:[%s603_s1 + $0x4] sm:$0xf]  ;;  %v350_v9 = vld [vmem:[%s603_s1 + $0x8] sm:$0xf0]  ;;  %v349_v10 = vor.u32 %v430_v6, %v348_v5  ;;  %v24_v13 = vld [vmem:[%s605_s2] sm:$0x3] }
   0x4   :  { %65 = vmatpush.bf16.msra.mxu0 %v357_v3  ;;  %v353_v11 = vor.u32 %v429_v8, %v350_v9  ;;  %v428_v12 = vld [vmem:[%s604_s0] sm:$0xff]  ;;  %v26_v14 = vperm.slane %v24_v13, 0  ;;  %v27_v15 = vperm.slane %v24_v13, 1  ;;  %s456_s1 = smov 32   ;;  %v104_v33 = vand.u32 127, %v103_v32  ;;  %s457_s2 = smov 64  }
   0x5   :  { %79 = vmatpush.bf16.msra.mxu1 %v361_v7  ;;  %v18_v61 = vld [vmem:[%s604_s0] sm:$0xff]   ;;  %v440_v9 = vld [vmem:[%s606_s3 + $0x38] sm:$0xff]  ;;  %v438_v13 = vld [vmem:[%s606_s3 + $0x28] sm:$0xff]  ;;  %vm335_vm5 = vcmask 64512  }
   0x6   :  { %vm105_vm1 = vcmp.lt.s32.totalorder %v104_v33, 32  ;;  %vm122_vm2 = vcmp.lt.s32.totalorder %v104_v33, 64  ;;  %v141_v0 = vunpack.c.l.bf16 %v18_v61  ;;  %v142_v6 = vunpack.c.h.bf16 %v18_v61  ;;  %307 = vmatpush.bf16.msra.mxu2 %v440_v9 }
   0x8   :  { %66 = vmatpush.bf16.msra.mxu0 %v349_v10  ;;  %v448_v10 = vld [vmem:[%s606_s3 + $0x78] sm:$0xff] }
   0x9   :  { %80 = vmatpush.bf16.msra.mxu1 %v353_v11  ;;  %321 = vmatpush.bf16.msra.mxu3 %v448_v10  ;;  %v439_v11 = vld [vmem:[%s606_s3 + $0x30] sm:$0xff] }
   0xa   :  { %308 = vmatpush.bf16.msra.mxu2 %v439_v11 }
   0xb   :  { %362 = vmatmul.msk.bf16.vlgmr.msra.gmra.mxu0 %vm55_vm0, %v428_v12 }
   0xc   :  { %363 = vmatmul.msk.bf16.vlgmr.msra.gmra.mxu1 %vm55_vm0, %v428_v12  ;;  %v447_v12 = vld [vmem:[%s606_s3 + $0x70] sm:$0xff] }
   0xd   :  { %322 = vmatpush.bf16.msra.mxu3 %v447_v12 }
   0xe   :  { %309 = vmatpush.bf16.msra.mxu2 %v438_v13 }
  0x88   :  { %v68_v16 = vpop.f32.mrf.mxu0 }
  0x89   :  { %v516_v17 = vadd.f32 %v68_v16, %v26_v14  ;;  %v82_v18 = vpop.f32.mrf.mxu1  ;;  %v445_v16 = vld [vmem:[%s606_s3 + $0x60] sm:$0xff] }
  0x8a   :  { %v518_v19 = vadd.f32 %v82_v18, %v27_v15  ;;  %v436_v18 = vld [vmem:[%s606_s3 + $0x18] sm:$0xff] }
  0x8b   :  { %v87_v20 = vand.u32 2147483647, %v516_v17 }
  0x8c   :  { %v88_v21 = vand.u32 2147483647, %v518_v19 }
  0x8d   :  { %v91_v22 = vadd.f32 1e-05, %v87_v20  ;;  %v444_v20 = vld [vmem:[%s606_s3 + $0x58] sm:$0xff] }
  0x8e   :  { %v92_v23 = vadd.f32 1e-05, %v88_v21  ;;  %v435_v21 = vld [vmem:[%s606_s3 + $0x10] sm:$0xff] }
  0x8f   :  { %95 = vrot.lane.b32.xlu0 %v91_v22, %s456_s1 }
  0x90   :  { %99 = vrot.lane.b32.xlu1 %v92_v23, %s456_s1  ;;  %v70_v24 = vpop.f32.mrf.mxu0 }
  0x91   :  { %v524_v25 = vadd.f32 %v70_v24, %v26_v14  ;;  %v84_v26 = vpop.f32.mrf.mxu1  ;;  %v446_v14 = vld [vmem:[%s606_s3 + $0x68] sm:$0xff] }
  0x92   :  { %v526_v27 = vadd.f32 %v84_v26, %v27_v15  ;;  %323 = vmatpush.bf16.msra.mxu3 %v446_v14  ;;  %v437_v15 = vld [vmem:[%s606_s3 + $0x20] sm:$0xff]  ;;  %v442_v24 = vld [vmem:[%s606_s3 + $0x48] sm:$0xff] }
  0x93   :  { %v89_v28 = vand.u32 2147483647, %v524_v25  ;;  %310 = vmatpush.bf16.msra.mxu2 %v437_v15  ;;  %v433_v26 = vld [vmem:[%s606_s3] sm:$0xff] }
  0x94   :  { %v90_v29 = vand.u32 2147483647, %v526_v27 }
  0x95   :  { %v93_v30 = vadd.f32 1e-05, %v89_v28  ;;  %v441_v28 = vld [vmem:[%s606_s3 + $0x40] sm:$0xff] }
  0x96   :  { %v94_v31 = vadd.f32 1e-05, %v90_v29  ;;  %324 = vmatpush.bf16.msra.mxu3 %v445_v16 }
  0x97   :  { %97 = vrot.lane.b32.xlu0 %v93_v30, %s456_s1  ;;  %311 = vmatpush.bf16.msra.mxu2 %v436_v18 }
  0x98   :  { %101 = vrot.lane.b32.xlu1 %v94_v31, %s456_s1 }
  0x9a   :  { %325 = vmatpush.bf16.msra.mxu3 %v444_v20 }
  0x9b   :  { %312 = vmatpush.bf16.msra.mxu2 %v435_v21 }
 0x101   :  { %v96_v34 = vpop.permute.xlu0 %95 }
 0x102   :  { %v100_v35 = vpop.permute.xlu1 %99 }
 0x103   :  { %v106_v36 = vsel %vm105_vm1, %v96_v34, %v100_v35  ;;  %v108_v37 = vsel %vm105_vm1, %v100_v35, %v96_v34 }
 0x104   :  { %v111_v38 = vadd.f32 %v106_v36, %v92_v23  ;;  %v110_v39 = vadd.f32 %v108_v37, %v91_v22  ;;  %v443_v22 = vld [vmem:[%s606_s3 + $0x50] sm:$0xff]  ;;  %v434_v23 = vld [vmem:[%s606_s3 + $0x8] sm:$0xff] }
 0x105   :  { %326 = vmatpush.bf16.msra.mxu3 %v443_v22  ;;  %313 = vmatpush.bf16.msra.mxu2 %v434_v23 }
 0x106   :  { %114 = vrot.lane.b32.xlu2 %v110_v39, %s457_s2  ;;  %118 = vrot.lane.b32.xlu0 %v111_v38, %s457_s2 }
 0x109   :  { %v98_v40 = vpop.permute.xlu0 %97  ;;  %327 = vmatpush.bf16.msra.mxu3 %v442_v24  ;;  %314 = vmatpush.bf16.msra.mxu2 %v433_v26 }
 0x10a   :  { %v102_v41 = vpop.permute.xlu1 %101 }
 0x10b   :  { %v107_v42 = vsel %vm105_vm1, %v98_v40, %v102_v41  ;;  %v109_v43 = vsel %vm105_vm1, %v102_v41, %v98_v40 }
 0x10c   :  { %v112_v44 = vadd.f32 %v109_v43, %v93_v30  ;;  %v113_v45 = vadd.f32 %v107_v42, %v94_v31 }
 0x10d   :  { %328 = vmatpush.bf16.msra.mxu3 %v441_v28 }
 0x10e   :  { %116 = vrot.lane.b32.xlu2 %v112_v44, %s457_s2  ;;  %120 = vrot.lane.b32.xlu1 %v113_v45, %s457_s2 }
 0x160   :  { %v115_v46 = vpop.permute.xlu2 %114 }
 0x168   :  { %v117_v53 = vpop.permute.xlu2 %116 }
 0x178   :  { %v119_v47 = vpop.permute.xlu0 %118 }
 0x179   :  { %v123_v48 = vsel %vm122_vm2, %v115_v46, %v119_v47  ;;  %v125_v49 = vsel %vm122_vm2, %v119_v47, %v115_v46 }
 0x17a   :  { %v127_v50 = vadd.f32 %v125_v49, %v110_v39  ;;  %v128_v51 = vadd.f32 %v123_v48, %v111_v38 }
 0x17c   :  { %v131_v52 = vadd.f32 %v128_v51, %v127_v50 }
 0x17e   :  { %452 = vrcp.f32 %v131_v52 }
 0x180   :  { %v121_v54 = vpop.permute.xlu1 %120 }
 0x181   :  { %v124_v55 = vsel %vm122_vm2, %v117_v53, %v121_v54  ;;  %v126_v56 = vsel %vm122_vm2, %v121_v54, %v117_v53 }
 0x182   :  { %v129_v57 = vadd.f32 %v126_v56, %v112_v44  ;;  %v130_v58 = vadd.f32 %v124_v55, %v113_v45 }
 0x184   :  { %v453_v59 = vpop.eup %452  ;;  %v132_v60 = vadd.f32 %v130_v58, %v129_v57 }
 0x185   :  { %v135_v62 = vmul.f32 %v453_v59, %v131_v52 }
 0x186   :  { %454 = vrcp.f32 %v132_v60 }
 0x187   :  { %v137_v63 = vsub.f32 2.0, %v135_v62 }
 0x189   :  { %v139_v1 = vmul.f32 %v453_v59, %v137_v63 }
 0x18b   :  { %v143_v2 = vmul.f32 %v141_v0, %v139_v1 }
 0x18c   :  { %v455_v3 = vpop.eup %454 }
 0x18d   :  { %v136_v4 = vmul.f32 %v455_v3, %v132_v60  ;;  %153 = vrot.lane.b32.xlu1 %v143_v2, %s457_s2  ;;  %147 = vrot.lane.b32.xlu2 %v143_v2, %s456_s1 }
 0x18f   :  { %v138_v5 = vsub.f32 2.0, %v136_v4 }
 0x191   :  { %v140_v7 = vmul.f32 %v455_v3, %v138_v5 }
 0x193   :  { %v144_v8 = vmul.f32 %v142_v6, %v140_v7 }
 0x195   :  { %149 = vrot.lane.b32.xlu0 %v144_v8, %s456_s1  ;;  %161 = vrot.lane.b32.xlu1 %v144_v8, %s458_s11 }
 0x196   :  { %155 = vrot.lane.b32.xlu2 %v144_v8, %s457_s2 }
 0x19d   :  { %159 = vrot.lane.b32.xlu0 %v143_v2, %s458_s11 }
 0x1e7   :  { %v148_v29 = vpop.permute.xlu2 %147 }
 0x1e8   :  { %v165_v36 = vsel %vm55_vm0, %v143_v2, %v148_v29 }
 0x1f0   :  { %v156_v33 = vpop.permute.xlu2 %155 }
 0x1ff   :  { %v154_v30 = vpop.permute.xlu1 %153 }
 0x200   :  { %v168_v38 = vsel %vm167_vm3, %v165_v36, %v154_v30 }
 0x207   :  { %v150_v31 = vpop.permute.xlu0 %149  ;;  %v162_v35 = vpop.permute.xlu1 %161 }
 0x208   :  { %v166_v32 = vsel %vm55_vm0, %v144_v8, %v150_v31 }
 0x209   :  { %v169_v34 = vsel %vm167_vm3, %v166_v32, %v156_v33 }
 0x20a   :  { %v172_v37 = vsel %vm170_vm4, %v169_v34, %v162_v35 }
 0x20b   :  { %v175_v41 = vmul.f32 %v172_v37, %v524_v25  ;;  %v176_v42 = vmul.f32 %v172_v37, %v526_v27 }
 0x20f   :  { %v160_v39 = vpop.permute.xlu0 %159 }
 0x210   :  { %v171_v40 = vsel %vm170_vm4, %v168_v38, %v160_v39 }
 0x211   :  { %v173_v43 = vmul.f32 %v171_v40, %v516_v17  ;;  %v174_v44 = vmul.f32 %v171_v40, %v518_v19 }
 0x213   :  { %v177_v45 = vpack.c.bf16 %v175_v41, %v173_v43  ;;  %v178_v46 = vpack.c.bf16 %v176_v42, %v174_v44 }
 0x215   :  { %315 = vmatmul.bf16.vlgmr.msra.gmra.mxu2 %v177_v45  ;;  %329 = vmatmul.bf16.vlgmr.msra.gmra.mxu3 %v178_v46 }
 0x298   :  { %v316_v47 = vpop.f32.mrf.mxu2  ;;  %v330_v48 = vpop.f32.mrf.mxu3 }
 0x299   :  { %v331_v49 = vadd.f32 %v330_v48, %v316_v47 }
 0x29b   :  { %336 = vst.msk [vmem:[%s607_s4] sm:$0xff] %vm335_vm5, %v331_v49 }
 0x2a0   :  { %v318_v50 = vpop.f32.mrf.mxu2  ;;  %v332_v25 = vpop.f32.mrf.mxu3 }
 0x2a1   :  { %v333_v51 = vadd.f32 %v332_v25, %v318_v50 }
 0x2a3   :  { %337 = vst.msk [vmem:[%s607_s4 + $0x8] sm:$0xff] %vm335_vm5, %v333_v51 }

</bundles_post_ra>
